<compile_context>
chip_gen: v5e
topology: v5e:2x2
jax: 0.10.0
libtpu: 0.0.40
codegen_flags: <defaults>
</compile_context>

<pallas_src>
import jax
import jax.numpy as jnp
from jax.experimental import pallas as pl
from jax.experimental.pallas import tpu as pltpu

HIDDEN = 32  # ComplexLinear(1, 32) -> ComplexLinear(32, 1)


def complexnet_kernel(xr_ref, xi_ref, w1_ref, w2_ref, b2_ref, yr_ref, yi_ref, xs_ref):
    # xr_ref / xi_ref: (1, TB)   batch on lanes
    # w1_ref: (2H, 8)  columns = [ * xr, * xi, * 1 (folded bias), 0, 0, 0, 0, 0 ]
    # w2_ref: (8, 2H)  rows 0/1 = real/imag contraction, rows 2..7 zero
    # b2_ref: (8, 1)   rows 0/1 = b2r-b2i, b2r+b2i
    # yr_ref / yi_ref: (1, TB)
    # xs_ref: (8, TB)  VMEM scratch holding the layer-1 MXU operand
    #
    # Assemble X = [xr; xi; 1; 0; 0; 0; 0; 0].  Rewritten fully every step so the
    # kernel stays correct under CORE_PARALLEL (per-core scratch, no init step).
    xs_ref[0:1, :] = xr_ref[...]
    xs_ref[1:2, :] = xi_ref[...]
    xs_ref[2:3, :] = jnp.ones(xr_ref.shape, jnp.float32)
    xs_ref[3:8, :] = jnp.zeros((5, xs_ref.shape[1]), jnp.float32)

    # --- ComplexLinear(1, H) with folded biases on the MXU, then complex_relu.
    h = jnp.maximum(
        jnp.dot(w1_ref[...], xs_ref[...], preferred_element_type=jnp.float32),
        0.0)                                                     # (2H, TB)

    # --- ComplexLinear(H, 1) on the MXU, bias add, final complex_relu.
    o = jnp.dot(w2_ref[...], h, preferred_element_type=jnp.float32) + b2_ref[...]
    o = jnp.maximum(o, 0.0)                                      # (8, TB)

    # Rows 0/1 carry real/imag; rows 2..7 are MXU padding and are dropped.
    yr_ref[...] = o[0:1, :]
    yi_ref[...] = o[1:2, :]


def _pack_params(W1r, b1r, W1i, b1i, W2r, b2r, W2i, b2i):
    """Fold complex-linear algebra + biases into three small MXU-ready arrays."""
    f32 = jnp.float32
    H = W1r.shape[0]
    w1r = W1r.reshape(H).astype(f32)
    w1i = W1i.reshape(H).astype(f32)
    b1r = b1r.reshape(H).astype(f32)
    b1i = b1i.reshape(H).astype(f32)
    w2r = W2r.reshape(H).astype(f32)
    w2i = W2i.reshape(H).astype(f32)
    b2r = b2r.reshape(()).astype(f32)
    b2i = b2i.reshape(()).astype(f32)

    # Layer 1: h_pre = W1c @ [xr; xi; 1; 0...].
    #   rows 0..H-1  (real): [ w1r, -w1i, b1r-b1i ]
    #   rows H..2H-1 (imag): [ w1i,  w1r, b1r+b1i ]
    top = jnp.stack([w1r, -w1i, b1r - b1i], axis=1)              # (H, 3)
    bot = jnp.stack([w1i, w1r, b1r + b1i], axis=1)               # (H, 3)
    w1c = jnp.pad(jnp.concatenate([top, bot], axis=0), ((0, 0), (0, 5)))   # (2H, 8)

    # Layer 2: o_pre = W2c @ [hr; hi]  (rows 2..7 zero-padded for MXU alignment).
    w2c = jnp.pad(
        jnp.stack([jnp.concatenate([w2r, -w2i]),
                   jnp.concatenate([w2i, w2r])], axis=0),
        ((0, 6), (0, 0)))                                        # (8, 2H)

    b2 = jnp.pad(jnp.stack([b2r - b2i, b2r + b2i]).reshape(2, 1),
                 ((0, 6), (0, 0)))                               # (8, 1)
    return w1c, w2c, b2


def _dimension_semantics():
    """CORE_PARALLEL to shard the batch grid across the 2 TCs on v7x; else parallel."""
    try:
        kind = jax.devices()[0].device_kind.lower()
    except Exception:
        kind = ""
    if "v7" in kind:
        return (pltpu.CORE_PARALLEL,)
    return ("parallel",)


def complexnet_forward(xr, xi, W1r, b1r, W1i, b1i, W2r, b2r, W2i, b2i,
                       *, block_b=8192):
    """xr, xi: (B, 1) (or (B,)) float32.  Returns (yr, yi), each (B, 1) float32.

    PyTorch parameter shapes: W1r/W1i (32, 1), b1r/b1i (32,), W2r/W2i (1, 32),
    b2r/b2i (1,).
    """
    assert block_b % 128 == 0
    B = xr.shape[0]
    H = W1r.shape[0]

    # Lane-dense views (free reshapes: (B,1) and (1,B) share the same linear layout).
    xr2 = xr.reshape(1, B).astype(jnp.float32)
    xi2 = xi.reshape(1, B).astype(jnp.float32)
    w1c, w2c, b2 = _pack_params(W1r, b1r, W1i, b1i, W2r, b2r, W2i, b2i)

    # Batch tile: lane-dense (multiple of 128), capped at block_b.  The last block
    # may be partial; Pallas masks OOB reads/writes and the math is per-lane.
    tb = min(block_b, pl.cdiv(B, 128) * 128)
    grid = (pl.cdiv(B, tb),)

    def make_call(dim_sem):
        return pl.pallas_call(
            complexnet_kernel,
            out_shape=(jax.ShapeDtypeStruct((1, B), jnp.float32),
                       jax.ShapeDtypeStruct((1, B), jnp.float32)),
            grid_spec=pltpu.PrefetchScalarGridSpec(
                num_scalar_prefetch=0,
                grid=grid,
                in_specs=[pl.BlockSpec((1, tb), lambda i: (0, i)),      # xr block
                          pl.BlockSpec((1, tb), lambda i: (0, i)),      # xi block
                          pl.BlockSpec((2 * H, 8), lambda i: (0, 0)),   # W1c, resident
                          pl.BlockSpec((8, 2 * H), lambda i: (0, 0)),   # W2c, resident
                          pl.BlockSpec((8, 1), lambda i: (0, 0))],      # b2,  resident
                out_specs=[pl.BlockSpec((1, tb), lambda i: (0, i)),
                           pl.BlockSpec((1, tb), lambda i: (0, i))],
                scratch_shapes=[pltpu.VMEM((8, tb), jnp.float32)]),
            compiler_params=pltpu.CompilerParams(dimension_semantics=dim_sem),
        )

    dim_sem = _dimension_semantics()
    try:
        yr2, yi2 = make_call(dim_sem)(xr2, xi2, w1c, w2c, b2)
    except Exception:
        if dim_sem == ("parallel",):
            raise
        # Conservative fallback if CORE_PARALLEL is rejected on this chip.
        yr2, yi2 = make_call(("parallel",))(xr2, xi2, w1c, w2c, b2)

    return yr2.reshape(B, 1), yi2.reshape(B, 1)


def _init_linear(key, out_f, in_f):
    """Deterministic init mimicking nn.Linear default: U(-1/sqrt(in), 1/sqrt(in))."""
    kw, kb = jax.random.split(key)
    bound = 1.0 / jnp.sqrt(jnp.float32(in_f))
    w = jax.random.uniform(kw, (out_f, in_f), jnp.float32, -bound, bound)
    b = jax.random.uniform(kb, (out_f,), jnp.float32, -bound, bound)
    return w, b


def _ref_forward(x, params):
    """Pure-JAX complex reference of ComplexNet.forward."""
    (W1r, b1r), (W1i, b1i), (W2r, b2r), (W2i, b2i) = params
    hi_prec = jax.lax.Precision.HIGHEST

    def clin(x, Wr, br, Wi, bi):
        fr = lambda t: jnp.dot(t, Wr.T, precision=hi_prec) + br
        fi = lambda t: jnp.dot(t, Wi.T, precision=hi_prec) + bi
        return (fr(x.real) - fi(x.imag)) + 1j * (fr(x.imag) + fi(x.real))

    def crelu(z):
        return jnp.maximum(z.real, 0.0) + 1j * jnp.maximum(z.imag, 0.0)

    x = crelu(clin(x, W1r, b1r, W1i, b1i))
    x = crelu(clin(x, W2r, b2r, W2i, b2i))
    return x


if __name__ == "__main__":
    key = jax.random.PRNGKey(0)
    _, _, k1r, k1i, k2r, k2i = jax.random.split(key, 6)

    # ln1 = ComplexLinear(1, 32): fc_r, fc_i each Linear(1, 32)
    W1r, b1r = _init_linear(k1r, HIDDEN, 1)
    W1i, b1i = _init_linear(k1i, HIDDEN, 1)
    # ln2 = ComplexLinear(32, 1): fc_r, fc_i each Linear(32, 1)
    W2r, b2r = _init_linear(k2r, 1, HIDDEN)
    W2i, b2i = _init_linear(k2i, 1, HIDDEN)
    params = ((W1r, b1r), (W1i, b1i), (W2r, b2r), (W2i, b2i))

    # Small primary case (B=8) + a ragged multi-block case (B=300, block_b=128)
    # to exercise the grid / partial-block path.  Both checked vs. the complex ref.
    for B, blk in ((8, 8192), (300, 128)):
        kr, ki = jax.random.split(jax.random.fold_in(key, B))
        xr = jax.random.normal(kr, (B, 1), jnp.float32)
        xi = jax.random.normal(ki, (B, 1), jnp.float32)

        yr, yi = complexnet_forward(xr, xi, W1r, b1r, W1i, b1i,
                                    W2r, b2r, W2i, b2i, block_b=blk)
        yr = jax.block_until_ready(yr)
        yi = jax.block_until_ready(yi)

        ref = _ref_forward(xr + 1j * xi, params)
        assert jnp.allclose(yr, ref.real, atol=2e-5, rtol=2e-5), ("real mismatch", B)
        assert jnp.allclose(yi, ref.imag, atol=2e-5, rtol=2e-5), ("imag mismatch", B)

    print("KERNEL_OK")
</pallas_src>

<mosaic_0001>
module attributes {stable_mosaic.version = 11 : i64} {
  func.func @complexnet_kernel(%arg0: i32, %arg1: memref<1x128xf32, #tpu.memory_space<vmem>>, %arg2: memref<1x128xf32, #tpu.memory_space<vmem>>, %arg3: memref<64x8xf32, #tpu.memory_space<vmem>>, %arg4: memref<8x64xf32, #tpu.memory_space<vmem>>, %arg5: memref<8x1xf32, #tpu.memory_space<vmem>>, %arg6: memref<1x128xf32, #tpu.memory_space<vmem>>, %arg7: memref<1x128xf32, #tpu.memory_space<vmem>>, %arg8: memref<8x128xf32, #tpu.memory_space<vmem>>) attributes {dimension_semantics = [#tpu.dimension_semantics<parallel>], iteration_bounds = array<i64: 1>, scalar_prefetch = 0 : i64, scratch_operands = 1 : i64, tpu.core_type = #tpu.core_type<tc>, window_params = [{transform_indices = @transform_0, window_bounds = array<i64: 1, 128>}, {transform_indices = @transform_1, window_bounds = array<i64: 1, 128>}, {pipeline_mode = #tpu.pipeline_mode<synchronous>, transform_indices = @transform_2, window_bounds = array<i64: 64, 8>}, {pipeline_mode = #tpu.pipeline_mode<synchronous>, transform_indices = @transform_3, window_bounds = array<i64: 8, 64>}, {pipeline_mode = #tpu.pipeline_mode<synchronous>, transform_indices = @transform_4, window_bounds = array<i64: 8, 1>}, {transform_indices = @transform_5, window_bounds = array<i64: 1, 128>}, {transform_indices = @transform_6, window_bounds = array<i64: 1, 128>}]} {
    %c0 = arith.constant 0 : index
    %c0_0 = arith.constant 0 : index
    %0 = vector.load %arg1[%c0, %c0_0] : memref<1x128xf32, #tpu.memory_space<vmem>>, vector<1x128xf32>
    %c0_1 = arith.constant 0 : index
    %c0_2 = arith.constant 0 : index
    %1 = vector.load %arg8[%c0_1, %c0_2] : memref<8x128xf32, #tpu.memory_space<vmem>>, vector<1x128xf32>
    tpu.vector_store %arg8[%c0_1, %c0_2], %0 {strides = array<i32>} : memref<8x128xf32, #tpu.memory_space<vmem>>, vector<1x128xf32>,
    %c0_3 = arith.constant 0 : index
    %c0_4 = arith.constant 0 : index
    %2 = vector.load %arg2[%c0_3, %c0_4] : memref<1x128xf32, #tpu.memory_space<vmem>>, vector<1x128xf32>
    %c1 = arith.constant 1 : index
    %c0_5 = arith.constant 0 : index
    %3 = vector.load %arg8[%c1, %c0_5] : memref<8x128xf32, #tpu.memory_space<vmem>>, vector<1x128xf32>
    tpu.vector_store %arg8[%c1, %c0_5], %2 {strides = array<i32>} : memref<8x128xf32, #tpu.memory_space<vmem>>, vector<1x128xf32>,
    %cst = arith.constant 1.000000e+00 : f32
    %4 = vector.broadcast %cst : f32 to vector<1x128xf32>
    %c2 = arith.constant 2 : index
    %c0_6 = arith.constant 0 : index
    %5 = vector.load %arg8[%c2, %c0_6] : memref<8x128xf32, #tpu.memory_space<vmem>>, vector<1x128xf32>
    tpu.vector_store %arg8[%c2, %c0_6], %4 {strides = array<i32>} : memref<8x128xf32, #tpu.memory_space<vmem>>, vector<1x128xf32>,
    %cst_7 = arith.constant 0.000000e+00 : f32
    %6 = vector.broadcast %cst_7 : f32 to vector<5x128xf32>
    %c3 = arith.constant 3 : index
    %c0_8 = arith.constant 0 : index
    %7 = vector.load %arg8[%c3, %c0_8] : memref<8x128xf32, #tpu.memory_space<vmem>>, vector<5x128xf32>
    tpu.vector_store %arg8[%c3, %c0_8], %6 {strides = array<i32>} : memref<8x128xf32, #tpu.memory_space<vmem>>, vector<5x128xf32>,
    %c0_9 = arith.constant 0 : index
    %c0_10 = arith.constant 0 : index
    %8 = vector.load %arg3[%c0_9, %c0_10] : memref<64x8xf32, #tpu.memory_space<vmem>>, vector<64x8xf32>
    %c0_11 = arith.constant 0 : index
    %c0_12 = arith.constant 0 : index
    %9 = vector.load %arg8[%c0_11, %c0_12] : memref<8x128xf32, #tpu.memory_space<vmem>>, vector<8x128xf32>
    %cst_13 = arith.constant dense<0.000000e+00> : vector<64x128xf32>
    %10 = tpu.matmul %8, %9, %cst_13 {dimension_numbers = #tpu.dot_dimension_numbers<[1], [0], [0], [1], [0, 0, 1, 1], [], []>} : vector<64x8xf32>, vector<8x128xf32>, vector<64x128xf32> -> vector<64x128xf32>
    %cst_14 = arith.constant 0.000000e+00 : f32
    %11 = vector.broadcast %cst_14 : f32 to vector<64x128xf32>
    %12 = arith.maximumf %10, %11 : vector<64x128xf32>
    %c0_15 = arith.constant 0 : index
    %c0_16 = arith.constant 0 : index
    %13 = vector.load %arg4[%c0_15, %c0_16] : memref<8x64xf32, #tpu.memory_space<vmem>>, vector<8x64xf32>
    %cst_17 = arith.constant dense<0.000000e+00> : vector<8x128xf32>
    %14 = tpu.matmul %13, %12, %cst_17 {dimension_numbers = #tpu.dot_dimension_numbers<[1], [0], [0], [1], [0, 0, 1, 1], [], []>} : vector<8x64xf32>, vector<64x128xf32>, vector<8x128xf32> -> vector<8x128xf32>
    %c0_18 = arith.constant 0 : index
    %c0_19 = arith.constant 0 : index
    %15 = vector.load %arg5[%c0_18, %c0_19] : memref<8x1xf32, #tpu.memory_space<vmem>>, vector<8x1xf32>
    %16 = vector.broadcast %15 : vector<8x1xf32> to vector<8x128xf32>
    %17 = arith.addf %14, %16 : vector<8x128xf32>
    %cst_20 = arith.constant 0.000000e+00 : f32
    %18 = vector.broadcast %cst_20 : f32 to vector<8x128xf32>
    %19 = arith.maximumf %17, %18 : vector<8x128xf32>
    %20 = vector.extract_strided_slice %19 {offsets = [0, 0], sizes = [1, 128], strides = [1, 1]} : vector<8x128xf32> to vector<1x128xf32>
    %c0_21 = arith.constant 0 : index
    %c0_22 = arith.constant 0 : index
    %21 = vector.load %arg6[%c0_21, %c0_22] : memref<1x128xf32, #tpu.memory_space<vmem>>, vector<1x128xf32>
    tpu.vector_store %arg6[%c0_21, %c0_22], %20 {strides = array<i32>} : memref<1x128xf32, #tpu.memory_space<vmem>>, vector<1x128xf32>,
    %22 = vector.extract_strided_slice %19 {offsets = [1, 0], sizes = [1, 128], strides = [1, 1]} : vector<8x128xf32> to vector<1x128xf32>
    %c0_23 = arith.constant 0 : index
    %c0_24 = arith.constant 0 : index
    %23 = vector.load %arg7[%c0_23, %c0_24] : memref<1x128xf32, #tpu.memory_space<vmem>>, vector<1x128xf32>
    tpu.vector_store %arg7[%c0_23, %c0_24], %22 {strides = array<i32>} : memref<1x128xf32, #tpu.memory_space<vmem>>, vector<1x128xf32>,
    return
  }
  func.func @transform_0(%arg0: i32) -> (i32, i32) {
    %c0_i32 = arith.constant 0 : i32
    %c0_i32_0 = arith.constant 0 : i32
    return %c0_i32, %arg0 : i32, i32
  }
  func.func @transform_1(%arg0: i32) -> (i32, i32) {
    %c0_i32 = arith.constant 0 : i32
    %c0_i32_0 = arith.constant 0 : i32
    return %c0_i32, %arg0 : i32, i32
  }
  func.func @transform_2(%arg0: i32) -> (i32, i32) {
    %c0_i32 = arith.constant 0 : i32
    %c0_i32_0 = arith.constant 0 : i32
    %c0_i32_1 = arith.constant 0 : i32
    return %c0_i32, %c0_i32_0 : i32, i32
  }
  func.func @transform_3(%arg0: i32) -> (i32, i32) {
    %c0_i32 = arith.constant 0 : i32
    %c0_i32_0 = arith.constant 0 : i32
    %c0_i32_1 = arith.constant 0 : i32
    return %c0_i32, %c0_i32_0 : i32, i32
  }
  func.func @transform_4(%arg0: i32) -> (i32, i32) {
    %c0_i32 = arith.constant 0 : i32
    %c0_i32_0 = arith.constant 0 : i32
    %c0_i32_1 = arith.constant 0 : i32
    return %c0_i32, %c0_i32_0 : i32, i32
  }
  func.func @transform_5(%arg0: i32) -> (i32, i32) {
    %c0_i32 = arith.constant 0 : i32
    %c0_i32_0 = arith.constant 0 : i32
    return %c0_i32, %arg0 : i32, i32
  }
  func.func @transform_6(%arg0: i32) -> (i32, i32) {
    %c0_i32 = arith.constant 0 : i32
    %c0_i32_0 = arith.constant 0 : i32
    return %c0_i32, %arg0 : i32, i32
  }
}

</mosaic_0001>

<bundles_post_ra>
// kernel: tpu_custom_call.1
= control target key start
LH: loop header
LB: loop body
LE: loop exit
PB: predicated region body
PF: predicated region fallthrough
CT: control target
= control target key end

     0   :  { %12 = vsyncpa [#allocation4], 0  ;;  %v248_v2 = vmov 1.0   ;;  %s338_s0 = inlined_call_operand.vmem [shape: f32[1,8], index: 0, kind: input, shape index: {}]   ;;  %s339_s1 = inlined_call_operand.vmem [shape: f32[1,8], index: 1, kind: input, shape index: {}]   ;;  %s340_s2 = inlined_call_operand.vmem [shape: f32[64,8], index: 2, kind: input, shape index: {}]   ;;  %s341_s3 = inlined_call_operand.vmem [shape: f32[8,64], index: 3, kind: input, shape index: {}]   ;;  %s342_s4 = inlined_call_operand.vmem [shape: f32[8,1], index: 4, kind: input, shape index: {}]   ;;  %s343_s5 = inlined_call_operand.hbm [shape: f32[1,8], index: 5, kind: output, shape index: {0}]   ;;  %s344_s6 = inlined_call_operand.hbm [shape: f32[1,8], index: 6, kind: output, shape index: {1}]  }
   0x1   :  { %v24_v0 = vld [vmem:[%s338_s0] sm:$0x1]  ;;  %28 = vst [vmem:[#allocation2 + $0x2] sm:$0x1] %v248_v2 }
   0x2   :  { %v26_v1 = vld [vmem:[%s339_s1] sm:$0x1]  ;;  %25 = vst [vmem:[#allocation2] sm:$0x1] %v24_v0 }
   0x3   :  { %27 = vst [vmem:[#allocation2 + $0x1] sm:$0x1] %v26_v1 }
   0x4   :  { %13 = vsyncpa [#allocation6], 0  ;;  %v249_v3 = vmov 0.0   ;;  %v33_v4 = vld [vmem:[%s340_s2 + $0x18] sm:$0xff]  ;;  %vm39_vm0 = vcmask 64512   ;;  %v36_v5 = vld [vmem:[%s340_s2 + $0x30] sm:$0xff] }
   0x5   :  { %29 = vst [vmem:[#allocation2 + $0x3] sm:$0x1f] %v249_v3  ;;  %v30_v7 = vld [vmem:[%s340_s2] sm:$0xff]  ;;  %v37_v9 = vld [vmem:[%s340_s2 + $0x38] sm:$0xff]  ;;  %v31_v10 = vld [vmem:[%s340_s2 + $0x8] sm:$0xff]  ;;  %v250_v15 = vmov 0  }
   0x6   :  { %v34_v8 = vld [vmem:[%s340_s2 + $0x20] sm:$0xff]  ;;  %v35_v11 = vld [vmem:[%s340_s2 + $0x28] sm:$0xff]  ;;  %v32_v12 = vld [vmem:[%s340_s2 + $0x10] sm:$0xff]  ;;  %195 = vset.pattern.permute.xlu0 %v250_v15  ;;  %vm120_vm1 = vcmask 523264   ;;  %s251_s17 = smov [#allocation5]   ;;  %s165_s21 = sshll.u32 %s344_s6, 4  ;;  %s166_s21 = int_to_ptr.hbm [resolvable:$true] %s165_s21 }
   0x7   :  { %v114_v14 = vld [vmem:[%s342_s4] sm:$0xff]  ;;  %s163_s18 = sshll.u32 %s251_s17, 4  ;;  %s252_s22 = smov [#allocation3]   ;;  %s164_s18 = int_to_ptr.vmem [resolvable:$true] %s163_s18 }
   0x8   :  { %117 = vperm.xlu0 %195, %v114_v14   ;;  %v113_v31 = vld [vmem:[%s341_s3] sm:$0xff]  ;;  %s152_s23 = sshll.u32 %s252_s22, 4  ;;  %s154_s26 = sshll.u32 %s343_s5, 4  ;;  %s153_s23 = int_to_ptr.vmem [resolvable:$true] %s152_s23  ;;  %s155_s26 = int_to_ptr.hbm [resolvable:$true] %s154_s26 }
   0xc   :  { %v38_v6 = vld [vmem:[#allocation2] sm:$0xff] }
   0xd   :  { %188 = vmatpush.msra.mxu2 %v38_v6  ;;  %189 = vmatpush.msra.mxu3 %v38_v6 }
   0xe   :  { %182 = vmatmul.msk.f32.vlgmr.msra.gmra.mxu2 %vm39_vm0, %v33_v4  ;;  %185 = vmatmul.msk.f32.vlgmr.msra.gmra.mxu3 %vm39_vm0, %v36_v5 }
   0xf   :  { %79 = vmatpush.msra.mxu0 %v38_v6 }
  0x10   :  { %179 = vmatmul.msk.f32.vlgmr.msra.gmra.mxu0 %vm39_vm0, %v30_v7 }
  0x16   :  { %183 = vmatmul.msk.f32.gmra.mxu2 %vm39_vm0, %v34_v8  ;;  %186 = vmatmul.msk.f32.gmra.mxu3 %vm39_vm0, %v37_v9 }
  0x18   :  { %180 = vmatmul.msk.f32.gmra.mxu0 %vm39_vm0, %v31_v10 }
  0x1e   :  { %184 = vmatmul.msk.f32.gmra.mxu2 %vm39_vm0, %v35_v11 }
  0x20   :  { %181 = vmatmul.msk.f32.gmra.mxu0 %vm39_vm0, %v32_v12 }
  0x7a   :  { %v118_v32 = vpop.permute.xlu0 %117 }
  0x8d   :  { %v81_v13 = vpop.f32.mrf.mxu0 }
  0x8e   :  { %v105_v30 = vmax.f32 %v81_v13, 0.0 }
  0x91   :  { %v90_v16 = vpop.f32.mrf.mxu2  ;;  %v99_v17 = vpop.f32.mrf.mxu3 }
  0x92   :  { %v111_v22 = vmax.f32 %v99_v17, 0.0  ;;  %v108_v27 = vmax.f32 %v90_v16, 0.0 }
  0x95   :  { %v84_v18 = vpop.f32.mrf.mxu0 }
  0x96   :  { %v106_v29 = vmax.f32 %v84_v18, 0.0 }
  0x99   :  { %v93_v19 = vpop.f32.mrf.mxu2  ;;  %v102_v20 = vpop.f32.mrf.mxu3 }
  0x9a   :  { %v112_v21 = vmax.f32 %v102_v20, 0.0  ;;  %v109_v26 = vmax.f32 %v93_v19, 0.0 }
  0x9c   :  { %132 = vmatpush.msra.mxu1 %v112_v21 }
  0x9d   :  { %v87_v25 = vpop.f32.mrf.mxu0 }
  0x9e   :  { %133 = vmatpush.msra.mxu1 %v111_v22  ;;  %v107_v28 = vmax.f32 %v87_v25, 0.0 }
  0xa1   :  { %v96_v23 = vpop.f32.mrf.mxu2 }
  0xa2   :  { %v110_v24 = vmax.f32 %v96_v23, 0.0 }
  0xa4   :  { %134 = vmatpush.msra.mxu1 %v110_v24 }
  0xa6   :  { %135 = vmatpush.msra.mxu1 %v109_v26 }
  0xa8   :  { %136 = vmatpush.msra.mxu1 %v108_v27 }
  0xaa   :  { %137 = vmatpush.msra.mxu1 %v107_v28 }
  0xac   :  { %138 = vmatpush.msra.mxu1 %v106_v29 }
  0xae   :  { %139 = vmatpush.msra.mxu1 %v105_v30 }
  0xaf   :  { %187 = vmatmul.msk.f32.vlgmr.msra.gmra.mxu1 %vm120_vm1, %v113_v31 }
 0x12c   :  { %v141_v33 = vpop.f32.mrf.mxu1 }
 0x12d   :  { %v142_v34 = vadd.f32 %v141_v33, %v118_v32 }
 0x12f   :  { %v144_v35 = vmax.f32 %v142_v34, 0.0 }
 0x131   :  { %146 = vst [vmem:[#allocation5 - $0x1] sm:$0x2] %v144_v35 }
 0x132   :  { %145 = vst [vmem:[#allocation3] sm:$0x1] %v144_v35  ;;  %168 = dma.vmem_to_hbm [thread:$0]  %s164_s18, 16, %s166_s21, [#allocation6]  }
 0x133   :  { %157 = dma.vmem_to_hbm [thread:$0]  %s153_s23, 16, %s155_s26, [#allocation4]  }
 0x134   :  { %244 = dma.done.wait [#allocation4], 16  }
 0x135   :  { %245 = vsyncadd [#allocation4], 4294967280 }
 0x136   :  { %246 = dma.done.wait [#allocation6], 16  }
 0x137   :  { %247 = vsyncadd [#allocation6], 4294967280 }
 0x138   :  { %177 = vsyncpa [#allocation4], 1 }
 0x139   :  { %178 = vsyncpa [#allocation6], 1 }

</bundles_post_ra>
